<compile_context>
chip_gen: v7x
topology: tpu7x:2x2x1
jax: 0.10.0
libtpu: 0.0.40
codegen_flags: <defaults>
</compile_context>

<pallas_src>
import jax
import jax.numpy as jnp
from jax import lax
from jax.experimental import pallas as pl
from jax.experimental.pallas import tpu as pltpu


# --------------------------------------------------------------------------- #
# Kernels
# --------------------------------------------------------------------------- #
def _x_cert_kernel(x_ref, cert_ref, o_ref):
    # o (tile_m, tile_nc) = x (tile_m, dim_in) @ cert (dim_in, tile_nc)
    # Canonical MXU orientation; lane-dense output block (last dim = cert axis).
    o_ref[...] = jnp.dot(
        x_ref[...], cert_ref[...], preferred_element_type=jnp.float32
    ).astype(o_ref.dtype)


def _cert_t_x_t_kernel(x_ref, cert_ref, o_ref):
    # o (tile_nc, tile_m) = cert.T @ x.T  (contract dim_in on both operands).
    # Used when batch >= 128 so the output's last dim (batch) is lane-dense and
    # no wrapper-side transpose of the full output is needed.
    o_ref[...] = lax.dot_general(
        cert_ref[...],
        x_ref[...],
        dimension_numbers=(((0,), (1,)), ((), ())),
        preferred_element_type=jnp.float32,
    ).astype(o_ref.dtype)


# --------------------------------------------------------------------------- #
# Tiling heuristics
# --------------------------------------------------------------------------- #
def _vmem_limit_bytes():
    """Scoped-VMEM request derived from the actual chip generation."""
    phys = 64 * 1024 * 1024  # conservative fallback (v7x physical size)
    try:
        info = pltpu.get_tpu_info()
        phys = int(getattr(info, "vmem_capacity_bytes", phys)) or phys
    except Exception:
        pass
    # Ask Mosaic for at most half of physical VMEM, capped at 64 MiB:
    #   v5e/v6e (128 MiB physical) -> 64 MiB, v7x (64 MiB physical) -> 32 MiB.
    return min(phys // 2, 64 * 1024 * 1024)


def _pick_tiles(batch, dim_in, num_cert, c_isz, x_isz, o_isz, budget,
                tile_m, tile_nc):
    """Largest (tile_m, tile_nc) that fits the VMEM budget with buffering."""

    def vmem_need(tm, tn):
        m_tiles = pl.cdiv(batch, tm)
        # cert and out tiles are double-buffered by the pipeline; x is a single
        # untiled VMEM copy when the whole batch fits one M tile.
        x_bufs = 1 if m_tiles == 1 else 2
        return (2 * dim_in * tn * c_isz
                + x_bufs * tm * dim_in * x_isz
                + 2 * tm * tn * o_isz)

    m_cands = [batch] if batch <= 512 else [512, 256, 128]
    if tile_m is not None:
        m_cands = [min(tile_m, batch)]
    nc_cands = [num_cert] + [c for c in (2048, 1024, 512, 256, 128) if c < num_cert]
    if tile_nc is not None:
        nc_cands = [min(tile_nc, num_cert)]

    for tm in m_cands:                 # prefer fewer M tiles (fewer cert re-reads)
        for tn in nc_cands:            # then the widest lane-dense cert tile
            if vmem_need(tm, tn) <= budget:
                return tm, tn
    # Nothing fits the budget: fall back to the smallest candidates.
    # TODO(synk): tile dim_in (K, reduction axis last + f32 VMEM accumulator with
    # pl.when init/finalize) if dim_in is so large that even this overflows VMEM.
    return m_cands[-1], nc_cands[-1]


# --------------------------------------------------------------------------- #
# Public wrapper
# --------------------------------------------------------------------------- #
def orthonormal_certificates_forward(certificates, x, *, tile_m=None, tile_nc=None,
                                     out_dtype=jnp.float32, compute_dtype=None):
    """certificates: (dim_in, num_certificates), x: (batch, dim_in).

    Returns (num_certificates, batch), matching
    torch.matmul(certificates.t(), x.permute((1, 0))).

    out_dtype defaults to float32 (like the PyTorch module); compute_dtype
    (e.g. jnp.bfloat16) optionally down-casts the operands at the boundary to
    halve HBM traffic on this bandwidth-bound matmul (f32 MXU accumulation is
    kept either way).
    """
    dim_in, num_cert = certificates.shape
    batch, dim_in_x = x.shape
    if dim_in != dim_in_x:
        raise ValueError(f"dim_in mismatch: certificates {dim_in} vs x {dim_in_x}")

    if compute_dtype is not None:
        certificates = certificates.astype(compute_dtype)
        x = x.astype(compute_dtype)

    c_isz = jnp.dtype(certificates.dtype).itemsize
    x_isz = jnp.dtype(x.dtype).itemsize
    o_isz = jnp.dtype(out_dtype).itemsize

    vmem_limit = _vmem_limit_bytes()
    budget = (vmem_limit * 3) // 4

    tile_m, tile_nc = _pick_tiles(batch, dim_in, num_cert,
                                  c_isz, x_isz, o_isz, budget, tile_m, tile_nc)
    tile_m = min(tile_m, batch)
    tile_nc = min(tile_nc, num_cert)

    m_tiles = pl.cdiv(batch, tile_m)
    nc_tiles = pl.cdiv(num_cert, tile_nc)
    grid = (m_tiles, nc_tiles)

    # batch >= 128: the (num_cert, batch) layout is already lane-dense, emit it
    # directly and skip the wrapper transpose (saves a full HBM round trip of
    # the output). batch < 128: lane-dense (batch, num_cert) block + cheap .T.
    direct_layout = batch >= 128

    # (8, 128) legality checks (mostly relevant for user-supplied tiles).
    if tile_nc != num_cert and tile_nc % 128 != 0:
        raise ValueError(
            f"tile_nc={tile_nc} must be a multiple of 128 or equal "
            f"num_certificates={num_cert}")
    m_align = 128 if direct_layout else 8
    if tile_m != batch and tile_m % m_align != 0:
        raise ValueError(
            f"tile_m={tile_m} must be a multiple of {m_align} or equal batch={batch}")

    if m_tiles == 1:
        # x's block never changes across the grid: keep one untiled copy
        # resident in VMEM instead of a double-buffered pipelined block.
        x_spec = pl.BlockSpec(memory_space=pltpu.MemorySpace.VMEM)
    else:
        x_spec = pl.BlockSpec((tile_m, dim_in), lambda i, j: (i, 0))
    cert_spec = pl.BlockSpec((dim_in, tile_nc), lambda i, j: (0, j))

    if direct_layout:
        kernel = _cert_t_x_t_kernel
        out_shape = jax.ShapeDtypeStruct((num_cert, batch), out_dtype)
        out_spec = pl.BlockSpec((tile_nc, tile_m), lambda i, j: (j, i))
    else:
        kernel = _x_cert_kernel
        out_shape = jax.ShapeDtypeStruct((batch, num_cert), out_dtype)
        out_spec = pl.BlockSpec((tile_m, tile_nc), lambda i, j: (i, j))

    flops = 2 * batch * dim_in * num_cert
    bytes_accessed = (dim_in * num_cert * c_isz
                      + batch * dim_in * x_isz
                      + batch * num_cert * o_isz)

    out = pl.pallas_call(
        kernel,
        out_shape=out_shape,
        grid_spec=pltpu.PrefetchScalarGridSpec(
            num_scalar_prefetch=0,
            grid=grid,
            in_specs=[x_spec, cert_spec],
            out_specs=out_spec,
        ),
        compiler_params=pltpu.CompilerParams(
            dimension_semantics=("parallel", "parallel"),
            vmem_limit_bytes=int(vmem_limit),
        ),
        cost_estimate=pl.CostEstimate(
            flops=int(flops),
            transcendentals=0,
            bytes_accessed=int(bytes_accessed),
        ),
    )(x, certificates)

    return out if direct_layout else out.T


# --------------------------------------------------------------------------- #
# Smoke tests
# --------------------------------------------------------------------------- #
if __name__ == "__main__":
    key = jax.random.PRNGKey(0)
    k_cert, k_x, k_x2 = jax.random.split(key, 3)
    # MXU f32 math is done via bf16 passes; keep the check tolerance realistic.
    tol = dict(atol=2e-2, rtol=2e-2)

    # 1) Shipped-style small shapes: single grid step, lane-dense (batch, nc)
    #    block + cheap wrapper transpose.
    dim_in, num_cert, batch = 32, 256, 8
    certificates = jax.random.normal(k_cert, (dim_in, num_cert), dtype=jnp.float32)
    x = jax.random.normal(k_x, (batch, dim_in), dtype=jnp.float32)
    out = jax.block_until_ready(orthonormal_certificates_forward(certificates, x))
    ref = certificates.T @ x.T
    assert out.shape == (num_cert, batch)
    assert jnp.allclose(out, ref, **tol)

    # 2) nc-tiled path with non-divisible num_certificates (module default is
    #    1000): exercises cdiv grid + masked edge tile + untiled-VMEM x.
    num_cert2 = 1000
    certificates2 = jax.random.normal(k_cert, (dim_in, num_cert2), dtype=jnp.float32)
    out2 = jax.block_until_ready(
        orthonormal_certificates_forward(certificates2, x, tile_nc=128))
    ref2 = certificates2.T @ x.T
    assert out2.shape == (num_cert2, batch)
    assert jnp.allclose(out2, ref2, **tol)

    # 3) Large-batch path: kernel emits (num_cert, batch) directly, no wrapper
    #    transpose (batch axis is lane-dense).
    batch3 = 256
    x3 = jax.random.normal(k_x2, (batch3, dim_in), dtype=jnp.float32)
    out3 = jax.block_until_ready(orthonormal_certificates_forward(certificates, x3))
    ref3 = certificates.T @ x3.T
    assert out3.shape == (num_cert, batch3)
    assert jnp.allclose(out3, ref3, **tol)

    print("KERNEL_OK")
</pallas_src>

<mosaic_0001>
module attributes {stable_mosaic.version = 11 : i64} {
  func.func @_x_cert_kernel(%arg0: i32, %arg1: i32, %arg2: memref<8x32xf32, #tpu.memory_space<vmem>>, %arg3: memref<32x256xf32, #tpu.memory_space<vmem>>, %arg4: memref<8x256xf32, #tpu.memory_space<vmem>>) attributes {dimension_semantics = [#tpu.dimension_semantics<parallel>, #tpu.dimension_semantics<parallel>], iteration_bounds = array<i64: 1, 1>, scalar_prefetch = 0 : i64, scratch_operands = 0 : i64, tpu.core_type = #tpu.core_type<tc>, window_params = [{pipeline_mode = #tpu.pipeline_mode<synchronous>, transform_indices = @transform_0, window_bounds = array<i64: 8, 32>}, {transform_indices = @transform_1, window_bounds = array<i64: 32, 256>}, {transform_indices = @transform_2, window_bounds = array<i64: 8, 256>}]} {
    %c0 = arith.constant 0 : index
    %c0_0 = arith.constant 0 : index
    %0 = vector.load %arg2[%c0, %c0_0] : memref<8x32xf32, #tpu.memory_space<vmem>>, vector<8x32xf32>
    %c0_1 = arith.constant 0 : index
    %c0_2 = arith.constant 0 : index
    %1 = vector.load %arg3[%c0_1, %c0_2] : memref<32x256xf32, #tpu.memory_space<vmem>>, vector<32x256xf32>
    %cst = arith.constant dense<0.000000e+00> : vector<8x256xf32>
    %2 = tpu.matmul %0, %1, %cst {dimension_numbers = #tpu.dot_dimension_numbers<[1], [0], [0], [1], [0, 0, 1, 1], [], []>} : vector<8x32xf32>, vector<32x256xf32>, vector<8x256xf32> -> vector<8x256xf32>
    %c0_3 = arith.constant 0 : index
    %c0_4 = arith.constant 0 : index
    %3 = vector.load %arg4[%c0_3, %c0_4] : memref<8x256xf32, #tpu.memory_space<vmem>>, vector<8x256xf32>
    tpu.vector_store %arg4[%c0_3, %c0_4], %2 {strides = array<i32>} : memref<8x256xf32, #tpu.memory_space<vmem>>, vector<8x256xf32>,
    return
  }
  func.func @transform_0(%arg0: i32, %arg1: i32) -> (i32, i32) {
    %c0_i32 = arith.constant 0 : i32
    %c0_i32_0 = arith.constant 0 : i32
    %c0_i32_1 = arith.constant 0 : i32
    return %c0_i32, %c0_i32_0 : i32, i32
  }
  func.func @transform_1(%arg0: i32, %arg1: i32) -> (i32, i32) {
    %c0_i32 = arith.constant 0 : i32
    %c0_i32_0 = arith.constant 0 : i32
    return %c0_i32, %arg1 : i32, i32
  }
  func.func @transform_2(%arg0: i32, %arg1: i32) -> (i32, i32) {
    %c0_i32 = arith.constant 0 : i32
    return %arg0, %arg1 : i32, i32
  }
}

</mosaic_0001>

<bundles_post_ra>
// kernel: tpu_custom_call.1
= control target key start
LH: loop header
LB: loop body
LE: loop exit
PB: predicated region body
PF: predicated region fallthrough
CT: control target
= control target key end

     0   :  { %7 = vsyncpa [#allocation3], 0  ;;  %s291_s0 = inlined_call_operand.hbm [shape: f32[8,32], index: 0, kind: input, shape index: {}]   ;;  %s292_s1 = inlined_call_operand.hbm [shape: f32[32,256], index: 1, kind: input, shape index: {}]   ;;  %s293_s2 = inlined_call_operand.hbm [shape: f32[8,256], index: 2, kind: output, shape index: {}]  }
   0x1   :  { %8 = vsyncpa [#allocation6], 0 }
   0x2   :  { %9 = vsyncpa [#allocation4], 0  ;;  %s227_s9 = smov [#allocation2]   ;;  %s228_s11 = smov [#allocation5]  }
   0x3   :  { %s16_s10 = sshll.u32 %s227_s9, 4  ;;  %s25_s12 = sshll.u32 %s228_s11, 4  ;;  %s17_s10 = int_to_ptr.vmem [resolvable:$true] %s16_s10  ;;  %s248_s12 = int_to_ptr.vmem [resolvable:$true] %s25_s12 }
   0x4   :  { %s155_s15 = scalar_lea.hbm %s291_s0, 128 }
   0x5   :  { %p156_p0 = scmp.ne.s32.totalorder %s291_s0, %s155_s15  ;;  %p159_p1 = scmp.lt.u32.totalorder %s155_s15, %s291_s0 }
   0x7   :  { %p161_p2 = pnand %p159_p1, %p156_p0 }
   0x9   :  { %164 = shalt.err (!%p161_p2)
}
   0xa   :  { %s165_s20 = scalar_lea.vmem %s17_s10, 128  ;;  %p170_p4 = scmp.lt.s32.totalorder %s17_s10, %s17_s10 }
   0xb   :  { %p166_p3 = scmp.ne.s32.totalorder %s17_s10, %s165_s20  ;;  %p171_p5 = scmp.lt.s32.totalorder %s165_s20, %s165_s20 }
   0xd   :  { %p172_p6 = por %p171_p5, %p170_p4 }
   0xf   :  { %p173_p7 = pnand %p172_p6, %p166_p3 }
  0x11   :  { %176 = shalt.err (!%p173_p7)
}
  0x12   :  { %19 = dma.hbm_to_vmem [thread:$0]  %s291_s0, 128, %s17_s10, [#allocation3]  }
  0x13   :  { %s177_s25 = scalar_lea.hbm %s292_s1, 1024 }
  0x14   :  { %p178_p8 = scmp.ne.s32.totalorder %s292_s1, %s177_s25  ;;  %p181_p9 = scmp.lt.u32.totalorder %s177_s25, %s292_s1 }
  0x16   :  { %p183_p10 = pnand %p181_p9, %p178_p8 }
  0x18   :  { %186 = shalt.err (!%p183_p10)
}
  0x19   :  { %s187_s30 = scalar_lea.vmem %s248_s12, 1024  ;;  %p192_p12 = scmp.lt.s32.totalorder %s248_s12, %s248_s12 }
  0x1a   :  { %p188_p11 = scmp.ne.s32.totalorder %s248_s12, %s187_s30  ;;  %p193_p13 = scmp.lt.s32.totalorder %s187_s30, %s187_s30 }
  0x1c   :  { %p194_p0 = por %p193_p13, %p192_p12 }
  0x1e   :  { %p195_p1 = pnand %p194_p0, %p188_p11 }
  0x20   :  { %198 = shalt.err (!%p195_p1)
}
  0x21   :  { %s229_s0 = smov 256   ;;  %s230_s3 = smov 16  }
  0x22   :  { %31 = dma.hbm_to_vmem [thread:$0]  %s292_s1, 1024, %s248_s12, [#allocation6], %s229_s0, %s229_s0, %s230_s3  }
  0x23   :  { %221 = dma.done.wait [#allocation3], 128  }
  0x24   :  { %222 = vsyncadd [#allocation3], 4294967168 }
  0x25   :  { %223 = dma.done.wait [#allocation6], 1024  }
  0x26   :  { %224 = vsyncadd [#allocation6], 4294966272  ;;  %v231_v0 = vmov 0.0   ;;  %v40_v1 = vld [vmem:[#allocation5 + $0x8] sm:$0xff]  ;;  %v42_v2 = vld [vmem:[#allocation5 + $0x18] sm:$0xff]  ;;  %vm47_vm0 = vcmask 261120  }
  0x27   :  { %115 = vmatprep.mubr.f32.mxu0 %v231_v0  ;;  %v39_v3 = vld [vmem:[#allocation5] sm:$0xff]  ;;  %v141_v4 = vpack.c.bf16 %v42_v2, %v40_v1  ;;  %v41_v5 = vld [vmem:[#allocation5 + $0x10] sm:$0xff]  ;;  %v44_v6 = vld [vmem:[#allocation5 + $0x28] sm:$0xff]  ;;  %s232_s1 = smov [#allocation7]  }
  0x28   :  { %v46_v7 = vld [vmem:[#allocation5 + $0x38] sm:$0xff]  ;;  %v143_v8 = vpack.c.bf16 %v41_v5, %v39_v3  ;;  %v43_v10 = vld [vmem:[#allocation5 + $0x20] sm:$0xff]  ;;  %v45_v11 = vld [vmem:[#allocation5 + $0x30] sm:$0xff]  ;;  %s130_s6 = sshll.u32 %s232_s1, 4  ;;  %s131_s6 = int_to_ptr.vmem [resolvable:$true] %s130_s6 }
  0x29   :  { %v145_v9 = vpack.c.bf16 %v46_v7, %v44_v6  ;;  %142 = vmatprep.subr.bf16.mxu0 %v141_v4  ;;  %v147_v12 = vpack.c.bf16 %v45_v11, %v43_v10  ;;  %v38_v13 = vld [vmem:[#allocation2] sm:$0xff]  ;;  %s199_s7 = scalar_lea.vmem %s131_s6, 256  ;;  %p204_p3 = scmp.lt.s32.totalorder %s131_s6, %s131_s6 }
  0x2a   :  { %144 = vmatpush1.bf16.msra.mxu0 %v143_v8  ;;  %p200_p2 = scmp.ne.s32.totalorder %s131_s6, %s199_s7  ;;  %p205_p4 = scmp.lt.s32.totalorder %s199_s7, %s199_s7 }
  0x2b   :  { %146 = vmatprep.subr.bf16.mxu0 %v145_v9 }
  0x2c   :  { %p206_p5 = por %p205_p4, %p204_p3 }
  0x2e   :  { %148 = vmatpush1.bf16.msra.mxu0 %v147_v12  ;;  %p207_p6 = pnand %p206_p5, %p200_p2 }
  0x31   :  { %140 = vmatmul.mubr.msk.f32.vlgmr.msra.gmra.mrb[0].mxu0 %vm47_vm0, %v38_v13 }
 0x104   :  { %v117_v14 = vpop.f32.mrb[0].mxu0 }
 0x105   :  { %122 = vst [vmem:[#allocation7] sm:$0xff] %v117_v14  ;;  %v119_v15 = vpop.f32.mrb[1].mxu0 }
 0x106   :  { %123 = vst [vmem:[#allocation7 + $0x8] sm:$0xff] %v119_v15 }
 0x107   :  { %210 = shalt.err (!%p207_p6)
}
 0x108   :  { %s211_s10 = scalar_lea.hbm %s293_s2, 256 }
 0x109   :  { %p212_p7 = scmp.ne.s32.totalorder %s293_s2, %s211_s10  ;;  %p215_p8 = scmp.lt.u32.totalorder %s211_s10, %s293_s2 }
 0x10b   :  { %p217_p9 = pnand %p215_p8, %p212_p7 }
 0x10d   :  { %220 = shalt.err (!%p217_p9)
}
 0x10e   :  { %133 = dma.vmem_to_hbm [thread:$0]  %s131_s6, 256, %s293_s2, [#allocation4]  }
 0x10f   :  { %225 = dma.done.wait [#allocation4], 256  }
 0x110   :  { %226 = vsyncadd [#allocation4], 4294967040 }
 0x111   :  { %137 = vsyncpa [#allocation3], 1 }
 0x112   :  { %138 = vsyncpa [#allocation6], 1 }
 0x113   :  { %139 = vsyncpa [#allocation4], 1 }

</bundles_post_ra>
